<compile_context>
chip_gen: v7x
topology: tpu7x:2x2x1
jax: 0.10.0
libtpu: 0.0.40
codegen_flags: <defaults>
</compile_context>

<pallas_src>
import jax
import jax.numpy as jnp
from jax.experimental import pallas as pl
from jax.experimental.pallas import tpu as pltpu


def _round_up(n: int, m: int) -> int:
    return ((n + m - 1) // m) * m


def iris_mlp_kernel(xt_ref, w1t_ref, b1_ref, w2t_ref, b2_ref, ot_ref):
    # xt_ref : (4, TB)   batch on lanes
    # w1t_ref: (32, 4)   = w1.T
    # b1_ref : (32, 1)
    # w2t_ref: (3, 32)   = w2.T
    # b2_ref : (3, 1)
    # ot_ref : (3, TB)
    x = xt_ref[...]                       # (4, TB)
    w1t = w1t_ref[...]                    # (32, 4)

    # Layer 1 on the VPU: K=4 badly underutilizes the MXU systolic depth, so
    # do it as 4 unrolled outer-product FMAs ((32,1)*(1,TB) broadcasts).
    h = b1_ref[...] + w1t[:, 0:1] * x[0:1, :]        # (32, TB)
    for k in range(1, 4):
        h = h + w1t[:, k : k + 1] * x[k : k + 1, :]
    h = jnp.maximum(h, 0.0)                          # ReLU

    # Layer 2 on the MXU: (3, 32) @ (32, TB) -> (3, TB), f32 accumulation.
    y = jnp.dot(w2t_ref[...], h, preferred_element_type=jnp.float32)
    y = y + b2_ref[...]                              # (3, TB) + (3, 1)
    ot_ref[...] = y.astype(ot_ref.dtype)


def iris_net_forward(x, w1, b1, w2, b2, *, tb=None):
    """x: (B, 4); w1: (4, 32); b1: (1, 32) or (32,); w2: (32, 3); b2: (1, 3) or (3,)."""
    B = x.shape[0]
    hidden = w1.shape[1]
    out_features = w2.shape[1]

    if tb is None:
        # Biggest lane tile that comfortably fits double-buffered on all
        # generations (v7x's 64 MiB VMEM included); clamp down for small B.
        tb = min(8192, _round_up(max(B, 1), 128))
    num_tiles = pl.cdiv(B, tb)
    b_pad = num_tiles * tb

    # Layout plumbing (wrapper-side, one-time): batch onto the lane dim.
    x_t = jnp.pad(x.T, ((0, 0), (0, b_pad - B)))          # (4, B_pad)
    w1_t = w1.T                                            # (32, 4)
    b1_c = jnp.reshape(b1, (hidden, 1))                    # (32, 1)
    w2_t = w2.T                                            # (3, 32)
    b2_c = jnp.reshape(b2, (out_features, 1))              # (3, 1)

    out_t = pl.pallas_call(
        iris_mlp_kernel,
        out_shape=jax.ShapeDtypeStruct((out_features, b_pad), jnp.float32),
        grid=(num_tiles,),
        in_specs=[
            pl.BlockSpec((4, tb), lambda i: (0, i)),                # x^T tile
            pl.BlockSpec((hidden, 4), lambda i: (0, 0)),            # w1^T (resident)
            pl.BlockSpec((hidden, 1), lambda i: (0, 0)),            # b1   (resident)
            pl.BlockSpec((out_features, hidden), lambda i: (0, 0)), # w2^T (resident)
            pl.BlockSpec((out_features, 1), lambda i: (0, 0)),      # b2   (resident)
        ],
        out_specs=pl.BlockSpec((out_features, tb), lambda i: (0, i)),
        compiler_params=pltpu.CompilerParams(
            dimension_semantics=("parallel",),
        ),
    )(x_t, w1_t, b1_c, w2_t, b2_c)

    return out_t.T[:B, :]                                   # (B, 3)


def init_params(key):
    # Deterministic init mimicking PyTorch nn.Linear default:
    # U(-1/sqrt(fan_in), 1/sqrt(fan_in)).
    k1, k2, k3, k4 = jax.random.split(key, 4)
    bound1 = 1.0 / jnp.sqrt(4.0)
    bound2 = 1.0 / jnp.sqrt(32.0)
    w1 = jax.random.uniform(k1, (4, 32), jnp.float32, -bound1, bound1)
    b1 = jax.random.uniform(k2, (1, 32), jnp.float32, -bound1, bound1)
    w2 = jax.random.uniform(k3, (32, 3), jnp.float32, -bound2, bound2)
    b2 = jax.random.uniform(k4, (1, 3), jnp.float32, -bound2, bound2)
    return w1, b1, w2, b2


if __name__ == "__main__":
    key = jax.random.PRNGKey(0)
    kx, kp = jax.random.split(key)

    batch = 8
    x = jax.random.normal(kx, (batch, 4), jnp.float32)
    w1, b1, w2, b2 = init_params(kp)

    out = iris_net_forward(x, w1, b1, w2, b2)
    out = jax.block_until_ready(out)

    # Pure-JAX reference check.
    ref = jnp.maximum(x @ w1 + b1, 0.0) @ w2 + b2
    assert out.shape == (batch, 3)
    assert jnp.allclose(out, ref, atol=1e-5, rtol=1e-5)

    print("KERNEL_OK")
</pallas_src>

<mosaic_0001>
module attributes {stable_mosaic.version = 11 : i64} {
  func.func @iris_mlp_kernel(%arg0: i32, %arg1: memref<4x128xf32, #tpu.memory_space<vmem>>, %arg2: memref<32x4xf32, #tpu.memory_space<vmem>>, %arg3: memref<32x1xf32, #tpu.memory_space<vmem>>, %arg4: memref<3x32xf32, #tpu.memory_space<vmem>>, %arg5: memref<3x1xf32, #tpu.memory_space<vmem>>, %arg6: memref<3x128xf32, #tpu.memory_space<vmem>>) attributes {dimension_semantics = [#tpu.dimension_semantics<parallel>], iteration_bounds = array<i64: 1>, scalar_prefetch = 0 : i64, scratch_operands = 0 : i64, tpu.core_type = #tpu.core_type<tc>, window_params = [{transform_indices = @transform_0, window_bounds = array<i64: 4, 128>}, {pipeline_mode = #tpu.pipeline_mode<synchronous>, transform_indices = @transform_1, window_bounds = array<i64: 32, 4>}, {pipeline_mode = #tpu.pipeline_mode<synchronous>, transform_indices = @transform_2, window_bounds = array<i64: 32, 1>}, {pipeline_mode = #tpu.pipeline_mode<synchronous>, transform_indices = @transform_3, window_bounds = array<i64: 3, 32>}, {pipeline_mode = #tpu.pipeline_mode<synchronous>, transform_indices = @transform_4, window_bounds = array<i64: 3, 1>}, {transform_indices = @transform_5, window_bounds = array<i64: 3, 128>}]} {
    %c0 = arith.constant 0 : index
    %c0_0 = arith.constant 0 : index
    %0 = vector.load %arg1[%c0, %c0_0] : memref<4x128xf32, #tpu.memory_space<vmem>>, vector<4x128xf32>
    %c0_1 = arith.constant 0 : index
    %c0_2 = arith.constant 0 : index
    %1 = vector.load %arg2[%c0_1, %c0_2] : memref<32x4xf32, #tpu.memory_space<vmem>>, vector<32x4xf32>
    %c0_3 = arith.constant 0 : index
    %c0_4 = arith.constant 0 : index
    %2 = vector.load %arg3[%c0_3, %c0_4] : memref<32x1xf32, #tpu.memory_space<vmem>>, vector<32x1xf32>
    %3 = vector.extract_strided_slice %1 {offsets = [0, 0], sizes = [32, 1], strides = [1, 1]} : vector<32x4xf32> to vector<32x1xf32>
    %4 = vector.extract_strided_slice %0 {offsets = [0, 0], sizes = [1, 128], strides = [1, 1]} : vector<4x128xf32> to vector<1x128xf32>
    %5 = vector.broadcast %3 : vector<32x1xf32> to vector<32x128xf32>
    %6 = vector.broadcast %4 : vector<1x128xf32> to vector<32x128xf32>
    %7 = arith.mulf %5, %6 : vector<32x128xf32>
    %8 = vector.broadcast %2 : vector<32x1xf32> to vector<32x128xf32>
    %9 = arith.addf %8, %7 : vector<32x128xf32>
    %10 = vector.extract_strided_slice %1 {offsets = [0, 1], sizes = [32, 1], strides = [1, 1]} : vector<32x4xf32> to vector<32x1xf32>
    %11 = vector.extract_strided_slice %0 {offsets = [1, 0], sizes = [1, 128], strides = [1, 1]} : vector<4x128xf32> to vector<1x128xf32>
    %12 = vector.broadcast %10 : vector<32x1xf32> to vector<32x128xf32>
    %13 = vector.broadcast %11 : vector<1x128xf32> to vector<32x128xf32>
    %14 = arith.mulf %12, %13 : vector<32x128xf32>
    %15 = arith.addf %9, %14 : vector<32x128xf32>
    %16 = vector.extract_strided_slice %1 {offsets = [0, 2], sizes = [32, 1], strides = [1, 1]} : vector<32x4xf32> to vector<32x1xf32>
    %17 = vector.extract_strided_slice %0 {offsets = [2, 0], sizes = [1, 128], strides = [1, 1]} : vector<4x128xf32> to vector<1x128xf32>
    %18 = vector.broadcast %16 : vector<32x1xf32> to vector<32x128xf32>
    %19 = vector.broadcast %17 : vector<1x128xf32> to vector<32x128xf32>
    %20 = arith.mulf %18, %19 : vector<32x128xf32>
    %21 = arith.addf %15, %20 : vector<32x128xf32>
    %22 = vector.extract_strided_slice %1 {offsets = [0, 3], sizes = [32, 1], strides = [1, 1]} : vector<32x4xf32> to vector<32x1xf32>
    %23 = vector.extract_strided_slice %0 {offsets = [3, 0], sizes = [1, 128], strides = [1, 1]} : vector<4x128xf32> to vector<1x128xf32>
    %24 = vector.broadcast %22 : vector<32x1xf32> to vector<32x128xf32>
    %25 = vector.broadcast %23 : vector<1x128xf32> to vector<32x128xf32>
    %26 = arith.mulf %24, %25 : vector<32x128xf32>
    %27 = arith.addf %21, %26 : vector<32x128xf32>
    %cst = arith.constant 0.000000e+00 : f32
    %28 = vector.broadcast %cst : f32 to vector<32x128xf32>
    %29 = arith.maximumf %27, %28 : vector<32x128xf32>
    %c0_5 = arith.constant 0 : index
    %c0_6 = arith.constant 0 : index
    %30 = vector.load %arg4[%c0_5, %c0_6] : memref<3x32xf32, #tpu.memory_space<vmem>>, vector<3x32xf32>
    %cst_7 = arith.constant dense<0.000000e+00> : vector<3x128xf32>
    %31 = tpu.matmul %30, %29, %cst_7 {dimension_numbers = #tpu.dot_dimension_numbers<[1], [0], [0], [1], [0, 0, 1, 1], [], []>} : vector<3x32xf32>, vector<32x128xf32>, vector<3x128xf32> -> vector<3x128xf32>
    %c0_8 = arith.constant 0 : index
    %c0_9 = arith.constant 0 : index
    %32 = vector.load %arg5[%c0_8, %c0_9] : memref<3x1xf32, #tpu.memory_space<vmem>>, vector<3x1xf32>
    %33 = vector.broadcast %32 : vector<3x1xf32> to vector<3x128xf32>
    %34 = arith.addf %31, %33 : vector<3x128xf32>
    %c0_10 = arith.constant 0 : index
    %c0_11 = arith.constant 0 : index
    %35 = vector.load %arg6[%c0_10, %c0_11] : memref<3x128xf32, #tpu.memory_space<vmem>>, vector<3x128xf32>
    tpu.vector_store %arg6[%c0_10, %c0_11], %34 {strides = array<i32>} : memref<3x128xf32, #tpu.memory_space<vmem>>, vector<3x128xf32>,
    return
  }
  func.func @transform_0(%arg0: i32) -> (i32, i32) {
    %c0_i32 = arith.constant 0 : i32
    %c0_i32_0 = arith.constant 0 : i32
    return %c0_i32, %arg0 : i32, i32
  }
  func.func @transform_1(%arg0: i32) -> (i32, i32) {
    %c0_i32 = arith.constant 0 : i32
    %c0_i32_0 = arith.constant 0 : i32
    %c0_i32_1 = arith.constant 0 : i32
    return %c0_i32, %c0_i32_0 : i32, i32
  }
  func.func @transform_2(%arg0: i32) -> (i32, i32) {
    %c0_i32 = arith.constant 0 : i32
    %c0_i32_0 = arith.constant 0 : i32
    %c0_i32_1 = arith.constant 0 : i32
    return %c0_i32, %c0_i32_0 : i32, i32
  }
  func.func @transform_3(%arg0: i32) -> (i32, i32) {
    %c0_i32 = arith.constant 0 : i32
    %c0_i32_0 = arith.constant 0 : i32
    %c0_i32_1 = arith.constant 0 : i32
    return %c0_i32, %c0_i32_0 : i32, i32
  }
  func.func @transform_4(%arg0: i32) -> (i32, i32) {
    %c0_i32 = arith.constant 0 : i32
    %c0_i32_0 = arith.constant 0 : i32
    %c0_i32_1 = arith.constant 0 : i32
    return %c0_i32, %c0_i32_0 : i32, i32
  }
  func.func @transform_5(%arg0: i32) -> (i32, i32) {
    %c0_i32 = arith.constant 0 : i32
    %c0_i32_0 = arith.constant 0 : i32
    return %c0_i32, %arg0 : i32, i32
  }
}

</mosaic_0001>

<bundles_post_ra>
// kernel: tpu_custom_call.1
= control target key start
LH: loop header
LB: loop body
LE: loop exit
PB: predicated region body
PF: predicated region fallthrough
CT: control target
= control target key end

     0   :  { %v334_v2 = vmov 0   ;;  %s419_s0 = inlined_call_operand.vmem [shape: f32[4,128], index: 0, kind: input, shape index: {}]   ;;  %s420_s1 = inlined_call_operand.vmem [shape: f32[32,4], index: 1, kind: input, shape index: {}]   ;;  %s421_s2 = inlined_call_operand.vmem [shape: f32[32,1], index: 2, kind: input, shape index: {}]   ;;  %s422_s3 = inlined_call_operand.vmem [shape: f32[3,32], index: 3, kind: input, shape index: {}]   ;;  %s423_s4 = inlined_call_operand.vmem [shape: f32[3,1], index: 4, kind: input, shape index: {}]   ;;  %s424_s5 = inlined_call_operand.hbm [shape: f32[3,128], index: 5, kind: output, shape index: {}]  }
   0x1   :  { %v26_v0 = vld [vmem:[%s421_s2] sm:$0xff]  ;;  %298 = vset.pattern.permute.xlu1 %v334_v2  ;;  %297 = vset.pattern.permute.xlu0 %v334_v2  ;;  %v27_v3 = vld [vmem:[%s421_s2 + $0x8] sm:$0xff] }
   0x2   :  { %v22_v1 = vld [vmem:[%s420_s1] sm:$0xff]  ;;  %60 = vperm.xlu1 %298, %v26_v0   ;;  %v23_v4 = vld [vmem:[%s420_s1 + $0x8] sm:$0xff] }
   0x3   :  { %32 = vperm.xlu0 %297, %v22_v1  }
   0x4   :  { %10 = vsyncpa [#allocation3], 0  ;;  %v25_v5 = vld [vmem:[%s420_s1 + $0x18] sm:$0xff]  ;;  %v335_v6 = vmov 1   ;;  %v28_v7 = vld [vmem:[%s421_s2 + $0x10] sm:$0xff]  ;;  %v336_v9 = vmov 2   ;;  %v50_v21 = vlaneseq }
   0x5   :  { %v24_v8 = vld [vmem:[%s420_s1 + $0x10] sm:$0xff]  ;;  %v337_v10 = vmov 3   ;;  %v29_v11 = vld [vmem:[%s421_s2 + $0x18] sm:$0xff]  ;;  %v338_v12 = vmov 0.0|0.0   ;;  %vm339_vm0 = vmmov 0   ;;  %v340_v13 = vmov 0.0  }
   0x6   :  { %65 = vperm.xlu1 %298, %v27_v3   ;;  %283 = vmatprep.subr.bf16.mxu0 %v338_v12  ;;  %v171_v14 = vld [vmem:[%s423_s4] sm:$0x7]  ;;  %v51_v24 = vshrl.u32 %v50_v21, 7  ;;  %vm177_vm1 = vcmask 261120   ;;  %s341_s11 = smov [#allocation2]  }
   0x7   :  { %37 = vperm.xlu0 %297, %v23_v4   ;;  %280 = vmatprep.mubr.msk.f32.mxu0 %vm339_vm0, %v340_v13  ;;  %v21_v29 = vld [vmem:[%s419_s0] sm:$0xf]  ;;  %s258_s12 = sshll.u32 %s341_s11, 4  ;;  %s259_s12 = int_to_ptr.vmem [resolvable:$true] %s258_s12 }
   0x8   :  { %v52_v27 = vsub.s32 0, %v51_v24  ;;  %v100_v28 = vsub.s32 1, %v51_v24  ;;  %v128_v33 = vsub.s32 2, %v51_v24  ;;  %v156_v36 = vsub.s32 3, %v51_v24  ;;  %s310_s13 = scalar_lea.vmem %s259_s12, 64  ;;  %p315_p1 = scmp.lt.s32.totalorder %s259_s12, %s259_s12 }
   0x9   :  { %p311_p0 = scmp.ne.s32.totalorder %s259_s12, %s310_s13  ;;  %p316_p2 = scmp.lt.s32.totalorder %s310_s13, %s310_s13 }
   0xa   :  { %299 = vset.pattern.permute.xlu1 %v335_v6  ;;  %v53_v31 = vrot.slane %v21_v29, %v52_v27  ;;  %v101_v32 = vrot.slane %v21_v29, %v100_v28  ;;  %v129_v40 = vrot.slane %v21_v29, %v128_v33  ;;  %v157_v44 = vrot.slane %v21_v29, %v156_v36 }
   0xb   :  { %47 = vperm.xlu0 %297, %v25_v5   ;;  %87 = vperm.xlu1 %299, %v23_v4   ;;  %p317_p3 = por %p316_p2, %p315_p1 }
   0xd   :  { %p318_p4 = pnand %p317_p3, %p311_p0 }
   0xf   :  { %70 = vperm.xlu0 %297, %v28_v7   ;;  %300 = vset.pattern.permute.xlu1 %v334_v2 }
  0x10   :  { %42 = vperm.xlu1 %300, %v24_v8  }
  0x13   :  { %302 = vset.pattern.permute.xlu0 %v335_v6 }
  0x14   :  { %83 = vperm.xlu0 %302, %v22_v1   ;;  %301 = vset.pattern.permute.xlu1 %v336_v9 }
  0x15   :  { %111 = vperm.xlu1 %301, %v22_v1  }
  0x18   :  { %91 = vperm.xlu0 %302, %v24_v8  }
  0x19   :  { %115 = vperm.xlu1 %301, %v23_v4  }
  0x1c   :  { %306 = vset.pattern.permute.xlu0 %v337_v10 }
  0x1d   :  { %143 = vperm.xlu0 %306, %v23_v4   ;;  %303 = vset.pattern.permute.xlu1 %v334_v2 }
  0x1e   :  { %75 = vperm.xlu1 %303, %v29_v11  }
  0x21   :  { %147 = vperm.xlu0 %306, %v24_v8  }
  0x22   :  { %304 = vset.pattern.permute.xlu1 %v335_v6 }
  0x23   :  { %95 = vperm.xlu1 %304, %v25_v5  }
  0x25   :  { %309 = vset.pattern.permute.xlu0 %v334_v2 }
  0x26   :  { %174 = vperm.xlu0 %309, %v171_v14  }
  0x27   :  { %305 = vset.pattern.permute.xlu1 %v337_v10 }
  0x28   :  { %139 = vperm.xlu1 %305, %v22_v1  }
  0x2c   :  { %307 = vset.pattern.permute.xlu1 %v336_v9 }
  0x2d   :  { %119 = vperm.xlu1 %307, %v24_v8  }
  0x31   :  { %123 = vperm.xlu1 %307, %v25_v5  }
  0x35   :  { %308 = vset.pattern.permute.xlu1 %v337_v10 }
  0x36   :  { %151 = vperm.xlu1 %308, %v25_v5  }
  0x81   :  { %v61_v15 = vpop.permute.xlu1 %60 }
  0x82   :  { %v33_v16 = vpop.permute.xlu0 %32 }
  0x83   :  { %v54_v38 = vmul.f32 %v53_v31, %v33_v16 }
  0x85   :  { %v66_v17 = vpop.permute.xlu1 %65  ;;  %v78_v46 = vadd.f32 %v61_v15, %v54_v38 }
  0x86   :  { %v38_v18 = vpop.permute.xlu0 %37 }
  0x87   :  { %v55_v35 = vmul.f32 %v53_v31, %v38_v18 }
  0x89   :  { %v79_v41 = vadd.f32 %v66_v17, %v55_v35 }
  0x8a   :  { %v48_v19 = vpop.permute.xlu0 %47  ;;  %v88_v20 = vpop.permute.xlu1 %87 }
  0x8b   :  { %v103_v39 = vmul.f32 %v101_v32, %v88_v20  ;;  %v57_v3 = vmul.f32 %v53_v31, %v48_v19  ;;  %v170_v19 = vld [vmem:[%s422_s3] sm:$0x7] }
  0x8d   :  { %v107_v47 = vadd.f32 %v103_v39, %v79_v41 }
  0x8e   :  { %v71_v22 = vpop.permute.xlu0 %70 }
  0x8f   :  { %v43_v23 = vpop.permute.xlu1 %42 }
  0x90   :  { %v56_v57 = vmul.f32 %v53_v31, %v43_v23 }
  0x92   :  { %v80_v63 = vadd.f32 %v71_v22, %v56_v57 }
  0x93   :  { %v84_v26 = vpop.permute.xlu0 %83 }
  0x94   :  { %v112_v25 = vpop.permute.xlu1 %111  ;;  %v102_v42 = vmul.f32 %v101_v32, %v84_v26 }
  0x95   :  { %v130_v50 = vmul.f32 %v129_v40, %v112_v25 }
  0x96   :  { %v106_v49 = vadd.f32 %v102_v42, %v78_v46 }
  0x97   :  { %v92_v34 = vpop.permute.xlu0 %91 }
  0x98   :  { %v116_v30 = vpop.permute.xlu1 %115  ;;  %v134_v54 = vadd.f32 %v130_v50, %v106_v49  ;;  %v104_v59 = vmul.f32 %v101_v32, %v92_v34 }
  0x99   :  { %v131_v43 = vmul.f32 %v129_v40, %v116_v30 }
  0x9a   :  { %v108_v4 = vadd.f32 %v104_v59, %v80_v63 }
  0x9b   :  { %v135_v51 = vadd.f32 %v131_v43, %v107_v47 }
  0x9c   :  { %v144_v45 = vpop.permute.xlu0 %143 }
  0x9d   :  { %v76_v37 = vpop.permute.xlu1 %75  ;;  %v159_v52 = vmul.f32 %v157_v44, %v144_v45 }
  0x9e   :  { %v81_v7 = vadd.f32 %v76_v37, %v57_v3 }
  0x9f   :  { %v163_v55 = vadd.f32 %v159_v52, %v135_v51 }
  0xa0   :  { %v148_v2 = vpop.permute.xlu0 %147 }
  0xa1   :  { %v167_v60 = vmax.f32 %v163_v55, 0.0  ;;  %v160_v9 = vmul.f32 %v157_v44, %v148_v2 }
  0xa2   :  { %v96_v48 = vpop.permute.xlu1 %95 }
  0xa3   :  { %v105_v5 = vmul.f32 %v101_v32, %v96_v48 }
  0xa5   :  { %v109_v11 = vadd.f32 %v105_v5, %v81_v7 }
  0xa7   :  { %v140_v53 = vpop.permute.xlu1 %139 }
  0xa8   :  { %v158_v56 = vmul.f32 %v157_v44, %v140_v53 }
  0xaa   :  { %v162_v58 = vadd.f32 %v158_v56, %v134_v54 }
  0xac   :  { %v166_v61 = vmax.f32 %v162_v58, 0.0  ;;  %v120_v62 = vpop.permute.xlu1 %119 }
  0xad   :  { %v132_v0 = vmul.f32 %v129_v40, %v120_v62 }
  0xae   :  { %v284_v1 = vpack.c.bf16 %v167_v60, %v166_v61 }
  0xaf   :  { %v136_v8 = vadd.f32 %v132_v0, %v108_v4 }
  0xb0   :  { %v124_v6 = vpop.permute.xlu1 %123  ;;  %285 = vmatpush3.bf16.msra.mxu0 %v284_v1 }
  0xb1   :  { %286 = vmatprep.subr.bf16.mxu0 %v338_v12  ;;  %v133_v10 = vmul.f32 %v129_v40, %v124_v6  ;;  %v164_v14 = vadd.f32 %v160_v9, %v136_v8  ;;  %v175_v12 = vpop.permute.xlu0 %174 }
  0xb3   :  { %v137_v15 = vadd.f32 %v133_v10, %v109_v11  ;;  %v168_v18 = vmax.f32 %v164_v14, 0.0 }
  0xb5   :  { %v152_v13 = vpop.permute.xlu1 %151 }
  0xb6   :  { %v161_v16 = vmul.f32 %v157_v44, %v152_v13 }
  0xb8   :  { %v165_v17 = vadd.f32 %v161_v16, %v137_v15 }
  0xba   :  { %v169_v20 = vmax.f32 %v165_v17, 0.0 }
  0xbc   :  { %v287_v21 = vpack.c.bf16 %v169_v20, %v168_v18 }
  0xbe   :  { %288 = vmatpush3.bf16.msra.mxu0 %v287_v21 }
  0xc1   :  { %281 = vmatmul.mubr.msk.f32.vlgmr.msra.gmra.mrb[0].mxu0 %vm177_vm1, %v170_v19 }
 0x194   :  { %v247_v22 = vpop.f32.mrb[0].mxu0 }
 0x195   :  { %v248_v23 = vadd.f32 %v247_v22, %v175_v12  ;;  %v282_v24 = vpop.f32.mrb[1].mxu0 }
 0x197   :  { %251 = vst [vmem:[#allocation2] sm:$0x7] %v248_v23 }
 0x198   :  { %321 = shalt.err (!%p318_p4)
}
 0x199   :  { %s322_s3 = scalar_lea.hbm %s424_s5, 64 }
 0x19a   :  { %p323_p5 = scmp.ne.s32.totalorder %s424_s5, %s322_s3  ;;  %p326_p6 = scmp.lt.u32.totalorder %s322_s3, %s424_s5 }
 0x19c   :  { %p328_p7 = pnand %p326_p6, %p323_p5 }
 0x19e   :  { %331 = shalt.err (!%p328_p7)
}
 0x19f   :  { %261 = dma.vmem_to_hbm [thread:$0]  %s259_s12, 64, %s424_s5, [#allocation3]  }
 0x1a0   :  { %332 = dma.done.wait [#allocation3], 64  }
 0x1a1   :  { %333 = vsyncadd [#allocation3], 4294967232 }
 0x1a2   :  { %265 = vsyncpa [#allocation3], 1 }

</bundles_post_ra>
